<compile_context>
chip_gen: v7x
topology: tpu7x:2x2x1
jax: 0.10.0
libtpu: 0.0.40
codegen_flags: <defaults>
</compile_context>

<pallas_src>
import jax
import jax.numpy as jnp
import numpy as np
from jax.experimental import pallas as pl
from jax.experimental.pallas import tpu as pltpu


def _round_up(x, m):
    return ((x + m - 1) // m) * m


def _cdiv(a, b):
    return (a + b - 1) // b


def ensemble_fused_kernel(b2_ref, x_ref, w1_ref, b1_ref, w2_ref, out_ref):
    """Fused ensemble MLP: hidden layers of all M models in one MXU pass.

    b2_ref : SMEM (1,)      -- mean over models of the output biases
    x_ref  : VMEM (tn, D)   -- flattened one-hot inputs (batch tile), bf16
    w1_ref : VMEM (D, M*H)  -- per-model W1 stacked along the lane axis, bf16
    b1_ref : VMEM (1, M*H)  -- f32
    w2_ref : VMEM (1, M*H)  -- per-model w2 stacked, pre-scaled by 1/M, f32
    out_ref: VMEM (1, tn)   -- ensemble-mean prediction (lane-dense row)
    """
    h = jnp.dot(x_ref[...], w1_ref[...], preferred_element_type=jnp.float32)
    h = jnp.maximum(h + b1_ref[...], 0.0)
    # Second layer + ensemble mean: lane reduce against w2/M, plus mean(b2).
    pred = jnp.sum(h * w2_ref[...], axis=-1, keepdims=True) + b2_ref[0]  # (tn, 1)
    # Lane-dense store: (tn,1)->(1,tn) is one XLU relayout on an idle slot and
    # turns tn/8 masked vst.msk into tn/128 full-width stores.
    out_ref[...] = pred.T


def fuse_ensemble_params(w1_mdh, b1_mh, w2_mh, b2_m1, *, compute_dtype=jnp.bfloat16):
    """One-time weight fusion (call when parameters are set, NOT per forward).

    Stacks every model's first layer into one (D, M*H) matrix so the whole
    ensemble's hidden activations come out of a single MXU pass, folds the 1/M
    ensemble mean into w2 and reduces b2 to its mean (a true scalar -> SMEM).
    """
    M, D, H = w1_mdh.shape
    MH = M * H
    w1_fused = jnp.transpose(w1_mdh, (1, 0, 2)).reshape(D, MH).astype(compute_dtype)
    b1_fused = b1_mh.astype(jnp.float32).reshape(1, MH)
    w2_scaled = (w2_mh.astype(jnp.float32) / M).reshape(1, MH)  # 1/M folded in
    b2_mean = jnp.mean(b2_m1.astype(jnp.float32)).reshape(1)    # 1-D -> 4B SMEM
    # TODO(synk): if the ensemble grows, pad/pair models so M*H is a multiple
    # of 256 to fill the 2x256 MXU output width on v6e/v7x.
    return w1_fused, b1_fused, w2_scaled, b2_mean


def _choose_batch_tile(N, D, MH, x_itemsize, block_n):
    """Pick the batch-tile size tn."""
    if N <= 128:
        # Single step; block dims == array dims is always layout-legal, and at
        # this size the kernel is launch/DMA-overhead bound anyway.
        return N
    # Multi-step: the lane-dense output block needs tn % 128 == 0.
    # VMEM budget sized for v5e's 16 MiB scoped default (comfortably inside
    # v6e/v7x): double-buffered x tile + resident weights + out tiles.
    budget = 12 * 1024 * 1024
    weight_bytes = D * MH * x_itemsize + 2 * MH * 4
    per_row = 2 * D * x_itemsize + 2 * 4
    tn_vmem = max(128, ((budget - weight_bytes) // per_row) // 128 * 128)
    # v7x has 2 TensorCores: make sure the "parallel" grid has >= 2 steps.
    tn_two_steps = max(128, _round_up(_cdiv(N, 2), 128))
    return max(128, min(block_n, tn_vmem, tn_two_steps))


def ensemble_forward(x_nlxa, w1_fused, b1_fused, w2_scaled, b2_mean, *, block_n=512):
    """Ensemble-mean prediction == TorchRegressorEnsemble.forward. Returns (N,)."""
    N, L, A = x_nlxa.shape
    D, MH = w1_fused.shape
    assert L * A == D, (L, A, D)

    # Flatten (L, A) -> D and feed the MXU in the weights' compute dtype
    # (bf16 halves the dominant x/W1 DMA traffic; one-hot x is exact in bf16).
    x_nd = x_nlxa.reshape(N, D).astype(w1_fused.dtype)

    tn = _choose_batch_tile(N, D, MH, x_nd.dtype.itemsize, block_n)
    num_tiles = _cdiv(N, tn)  # partial final tile handled by Pallas; no host-side pad

    # Grid-invariant weights: single-buffer when there are multiple grid steps
    # (default double-buffering wastes D*MH bytes of VMEM on operands that are
    # never re-fetched). With a single step it is irrelevant.
    weight_pipe = dict(pipeline_mode=pl.Buffered(1)) if num_tiles > 1 else {}

    out = pl.pallas_call(
        ensemble_fused_kernel,
        out_shape=jax.ShapeDtypeStruct((1, N), jnp.float32),
        grid=(num_tiles,),
        in_specs=[
            pl.BlockSpec(memory_space=pltpu.MemorySpace.SMEM),        # mean(b2) scalar
            pl.BlockSpec((tn, D), lambda i: (i, 0)),                  # x batch tile
            pl.BlockSpec((D, MH), lambda i: (0, 0), **weight_pipe),   # fused W1 (resident)
            pl.BlockSpec((1, MH), lambda i: (0, 0), **weight_pipe),   # fused b1
            pl.BlockSpec((1, MH), lambda i: (0, 0), **weight_pipe),   # fused w2 / M
        ],
        out_specs=pl.BlockSpec((1, tn), lambda i: (0, i)),            # lane-dense row
        compiler_params=pltpu.CompilerParams(
            # Batch tiles are independent -> shard across both TCs on v7x.
            dimension_semantics=("parallel",),
        ),
    )(b2_mean, x_nd, w1_fused, b1_fused, w2_scaled)

    return out[0]


def reference_forward(x_nlxa, w1_mdh, b1_mh, w2_mh, b2_m1):
    """Pure-JAX f32 reference, mirrors the per-model torch forward + mean."""
    N = x_nlxa.shape[0]
    x = x_nlxa.reshape(N, -1)
    preds = []
    for m in range(w1_mdh.shape[0]):
        h = jnp.maximum(x @ w1_mdh[m] + b1_mh[m], 0.0)
        preds.append(h @ w2_mh[m][:, None] + b2_m1[m, 0])
    pred_nxm = jnp.concatenate(preds, axis=1)
    return jnp.mean(pred_nxm, axis=1)


if __name__ == "__main__":
    # Small shapes implied by the module: batch N=8 one-hot sequences of
    # length L=8 over a 4-letter alphabet -> D=32; hidden H=32; ensemble of
    # M=4 models (fused hidden width M*H = 128 = one lane width).
    N, L, A, H, M = 8, 8, 4, 32, 4
    D = L * A

    key = jax.random.PRNGKey(0)
    k_idx, k_w1, k_b1, k_w2, k_b2 = jax.random.split(key, 5)

    # One-hot encoded sequences, as produced by
    # type_check_and_one_hot_encode_sequences (exact in bf16).
    idx_nl = jax.random.randint(k_idx, (N, L), 0, A)
    x_nlxa = jax.nn.one_hot(idx_nl, A, dtype=jnp.float32)

    # Deterministic stacked ensemble parameters.
    w1_mdh = jax.random.normal(k_w1, (M, D, H), dtype=jnp.float32) * 0.1
    b1_mh = jax.random.normal(k_b1, (M, H), dtype=jnp.float32) * 0.1
    w2_mh = jax.random.normal(k_w2, (M, H), dtype=jnp.float32) * 0.1
    b2_m1 = jax.random.normal(k_b2, (M, 1), dtype=jnp.float32) * 0.1

    # Fuse once (parameter-set time), not per forward call.
    fused = fuse_ensemble_params(w1_mdh, b1_mh, w2_mh, b2_m1)

    out = ensemble_forward(x_nlxa, *fused)
    out = jax.block_until_ready(out)

    ref = reference_forward(x_nlxa, w1_mdh, b1_mh, w2_mh, b2_m1)
    assert out.shape == (N,), out.shape
    # bf16 W1/x on the MXU (f32 accumulate, f32 epilogue): relaxed tolerance.
    np.testing.assert_allclose(np.asarray(out), np.asarray(ref), rtol=1e-2, atol=1e-2)

    print("KERNEL_OK")
</pallas_src>

<mosaic_0001>
module attributes {stable_mosaic.version = 11 : i64} {
  func.func @ensemble_fused_kernel(%arg0: i32, %arg1: memref<1xf32, #tpu.memory_space<smem>>, %arg2: memref<8x32xbf16, #tpu.memory_space<vmem>>, %arg3: memref<32x128xbf16, #tpu.memory_space<vmem>>, %arg4: memref<1x128xf32, #tpu.memory_space<vmem>>, %arg5: memref<1x128xf32, #tpu.memory_space<vmem>>, %arg6: memref<1x8xf32, #tpu.memory_space<vmem>>) attributes {dimension_semantics = [#tpu.dimension_semantics<parallel>], iteration_bounds = array<i64: 1>, scalar_prefetch = 0 : i64, scratch_operands = 0 : i64, tpu.core_type = #tpu.core_type<tc>, window_params = [{transform_indices = @transform_0, window_bounds = array<i64: 1>}, {transform_indices = @transform_1, window_bounds = array<i64: 8, 32>}, {pipeline_mode = #tpu.pipeline_mode<synchronous>, transform_indices = @transform_2, window_bounds = array<i64: 32, 128>}, {pipeline_mode = #tpu.pipeline_mode<synchronous>, transform_indices = @transform_3, window_bounds = array<i64: 1, 128>}, {pipeline_mode = #tpu.pipeline_mode<synchronous>, transform_indices = @transform_4, window_bounds = array<i64: 1, 128>}, {transform_indices = @transform_5, window_bounds = array<i64: 1, 8>}]} {
    %c0 = arith.constant 0 : index
    %c0_0 = arith.constant 0 : index
    %0 = vector.load %arg2[%c0, %c0_0] : memref<8x32xbf16, #tpu.memory_space<vmem>>, vector<8x32xbf16>
    %c0_1 = arith.constant 0 : index
    %c0_2 = arith.constant 0 : index
    %1 = vector.load %arg3[%c0_1, %c0_2] : memref<32x128xbf16, #tpu.memory_space<vmem>>, vector<32x128xbf16>
    %cst = arith.constant dense<0.000000e+00> : vector<8x128xf32>
    %2 = tpu.matmul %0, %1, %cst {dimension_numbers = #tpu.dot_dimension_numbers<[1], [0], [0], [1], [0, 0, 1, 1], [], []>} : vector<8x32xbf16>, vector<32x128xbf16>, vector<8x128xf32> -> vector<8x128xf32>
    %c0_3 = arith.constant 0 : index
    %c0_4 = arith.constant 0 : index
    %3 = vector.load %arg4[%c0_3, %c0_4] : memref<1x128xf32, #tpu.memory_space<vmem>>, vector<1x128xf32>
    %4 = vector.broadcast %3 : vector<1x128xf32> to vector<8x128xf32>
    %5 = arith.addf %2, %4 : vector<8x128xf32>
    %cst_5 = arith.constant 0.000000e+00 : f32
    %6 = vector.broadcast %cst_5 : f32 to vector<8x128xf32>
    %7 = arith.maximumf %5, %6 : vector<8x128xf32>
    %c0_6 = arith.constant 0 : index
    %c0_7 = arith.constant 0 : index
    %8 = vector.load %arg5[%c0_6, %c0_7] : memref<1x128xf32, #tpu.memory_space<vmem>>, vector<1x128xf32>
    %9 = vector.broadcast %8 : vector<1x128xf32> to vector<8x128xf32>
    %10 = arith.mulf %7, %9 : vector<8x128xf32>
    %cst_8 = arith.constant dense<0.000000e+00> : vector<8xf32>
    %11 = vector.multi_reduction <add>, %10, %cst_8 [1] : vector<8x128xf32> to vector<8xf32>
    %12 = vector.shape_cast %11 : vector<8xf32> to vector<8x1xf32>
    %c0_9 = arith.constant 0 : index
    %13 = memref.load %arg1[%c0_9] : memref<1xf32, #tpu.memory_space<smem>>
    %14 = vector.broadcast %13 : f32 to vector<8x1xf32>
    %15 = arith.addf %12, %14 : vector<8x1xf32>
    %16 = tpu.transpose %15, [1, 0] : vector<8x1xf32> -> vector<1x8xf32>
    %c0_10 = arith.constant 0 : index
    %c0_11 = arith.constant 0 : index
    %17 = vector.load %arg6[%c0_10, %c0_11] : memref<1x8xf32, #tpu.memory_space<vmem>>, vector<1x8xf32>
    tpu.vector_store %arg6[%c0_10, %c0_11], %16 {strides = array<i32>} : memref<1x8xf32, #tpu.memory_space<vmem>>, vector<1x8xf32>,
    return
  }
  func.func @transform_0(%arg0: i32) -> i32 {
    %c0_i32 = arith.constant 0 : i32
    %c0_i32_0 = arith.constant 0 : i32
    return %c0_i32 : i32
  }
  func.func @transform_1(%arg0: i32) -> (i32, i32) {
    %c0_i32 = arith.constant 0 : i32
    %c0_i32_0 = arith.constant 0 : i32
    return %arg0, %c0_i32 : i32, i32
  }
  func.func @transform_2(%arg0: i32) -> (i32, i32) {
    %c0_i32 = arith.constant 0 : i32
    %c0_i32_0 = arith.constant 0 : i32
    %c0_i32_1 = arith.constant 0 : i32
    return %c0_i32, %c0_i32_0 : i32, i32
  }
  func.func @transform_3(%arg0: i32) -> (i32, i32) {
    %c0_i32 = arith.constant 0 : i32
    %c0_i32_0 = arith.constant 0 : i32
    %c0_i32_1 = arith.constant 0 : i32
    return %c0_i32, %c0_i32_0 : i32, i32
  }
  func.func @transform_4(%arg0: i32) -> (i32, i32) {
    %c0_i32 = arith.constant 0 : i32
    %c0_i32_0 = arith.constant 0 : i32
    %c0_i32_1 = arith.constant 0 : i32
    return %c0_i32, %c0_i32_0 : i32, i32
  }
  func.func @transform_5(%arg0: i32) -> (i32, i32) {
    %c0_i32 = arith.constant 0 : i32
    %c0_i32_0 = arith.constant 0 : i32
    return %c0_i32, %arg0 : i32, i32
  }
}

</mosaic_0001>

<bundles_post_ra>
// kernel: tpu_custom_call.1
= control target key start
LH: loop header
LB: loop body
LE: loop exit
PB: predicated region body
PF: predicated region fallthrough
CT: control target
= control target key end

     0   :  { %11 = vsyncpa [#allocation4], 0  ;;  %s367_s0 = inlined_call_operand.<no memory space> [shape: f32[1], index: 0, kind: input, shape index: {}]   ;;  %s368_s1 = inlined_call_operand.hbm [shape: bf16[8,32], index: 1, kind: input, shape index: {}]   ;;  %s369_s2 = inlined_call_operand.hbm [shape: bf16[32,128], index: 2, kind: input, shape index: {}]   ;;  %s370_s3 = inlined_call_operand.vmem [shape: f32[1,128], index: 3, kind: input, shape index: {}]   ;;  %s371_s4 = inlined_call_operand.vmem [shape: f32[1,128], index: 4, kind: input, shape index: {}]   ;;  %s372_s5 = inlined_call_operand.hbm [shape: f32[1,8], index: 5, kind: output, shape index: {}]  }
   0x1   :  { %12 = vsyncpa [#allocation7], 0 }
   0x2   :  { %13 = vsyncpa [#allocation5], 0  ;;  %s278_s18 = smov [#allocation3]   ;;  %s279_s20 = smov [#allocation6]  }
   0x3   :  { %s22_s19 = sshll.u32 %s278_s18, 4  ;;  %s31_s21 = sshll.u32 %s279_s20, 4  ;;  %s23_s19 = int_to_ptr.vmem [resolvable:$true] %s22_s19  ;;  %s315_s21 = int_to_ptr.vmem [resolvable:$true] %s31_s21 }
   0x4   :  { %s206_s24 = scalar_lea.hbm %s368_s1, 64 }
   0x5   :  { %p207_p0 = scmp.ne.s32.totalorder %s368_s1, %s206_s24  ;;  %p210_p1 = scmp.lt.u32.totalorder %s206_s24, %s368_s1 }
   0x7   :  { %p212_p2 = pnand %p210_p1, %p207_p0 }
   0x9   :  { %215 = shalt.err (!%p212_p2)
}
   0xa   :  { %s216_s29 = scalar_lea.vmem %s23_s19, 64  ;;  %p221_p4 = scmp.lt.s32.totalorder %s23_s19, %s23_s19 }
   0xb   :  { %p217_p3 = scmp.ne.s32.totalorder %s23_s19, %s216_s29  ;;  %p222_p5 = scmp.lt.s32.totalorder %s216_s29, %s216_s29 }
   0xd   :  { %p223_p6 = por %p222_p5, %p221_p4 }
   0xf   :  { %p224_p7 = pnand %p223_p6, %p217_p3 }
  0x11   :  { %227 = shalt.err (!%p224_p7)
}
  0x12   :  { %25 = dma.hbm_to_vmem [thread:$0]  %s368_s1, 64, %s23_s19, [#allocation4]  }
  0x13   :  { %s228_s9 = scalar_lea.hbm %s369_s2, 256 }
  0x14   :  { %p229_p8 = scmp.ne.s32.totalorder %s369_s2, %s228_s9  ;;  %p232_p9 = scmp.lt.u32.totalorder %s228_s9, %s369_s2 }
  0x16   :  { %p234_p10 = pnand %p232_p9, %p229_p8 }
  0x18   :  { %237 = shalt.err (!%p234_p10)
}
  0x19   :  { %s238_s14 = scalar_lea.vmem %s315_s21, 256  ;;  %p243_p12 = scmp.lt.s32.totalorder %s315_s21, %s315_s21 }
  0x1a   :  { %p239_p11 = scmp.ne.s32.totalorder %s315_s21, %s238_s14  ;;  %p244_p13 = scmp.lt.s32.totalorder %s238_s14, %s238_s14 }
  0x1c   :  { %p245_p0 = por %p244_p13, %p243_p12 }
  0x1e   :  { %p246_p1 = pnand %p245_p0, %p239_p11 }
  0x20   :  { %249 = shalt.err (!%p246_p1)
}
  0x21   :  { %s280_s1 = smov 64   ;;  %s281_s15 = smov 4  }
  0x22   :  { %37 = dma.hbm_to_vmem [thread:$0]  %s369_s2, 256, %s315_s21, [#allocation7], %s280_s1, %s280_s1, %s281_s15  }
  0x23   :  { %272 = dma.done.wait [#allocation4], 64  }
  0x24   :  { %273 = vsyncadd [#allocation4], 4294967232 }
  0x25   :  { %274 = dma.done.wait [#allocation7], 256  }
  0x26   :  { %275 = vsyncadd [#allocation7], 4294967040  ;;  %v282_v0 = vmov 0.0   ;;  %vm283_vm0 = vmmov 0   ;;  %v204_v1 = vld [vmem:[#allocation6] sm:$0xff]   ;;  %v205_v2 = vld [vmem:[#allocation6 + $0x8] sm:$0xff]   ;;  %v129_v13 = vstv %s367_s0 }
  0x27   :  { %189 = vmatprep.subr.bf16.mxu0 %v282_v0  ;;  %193 = vmatprep.mubr.msk.bf16.mxu0 %vm283_vm0, %v282_v0  ;;  %v49_v3 = vld [vmem:[#allocation3] sm:$0xf]  ;;  %vm73_vm1 = vcmask 261120   ;;  %vm163_vm2 = vcmask 57344  }
  0x28   :  { %190 = vmatpush3.bf16.msra.mxu0 %v204_v1  ;;  %v181_v4 = vld [vmem:[%s370_s3] ss:$0 sm:$0xff]  ;;  %s284_s3 = smov [#allocation8]  }
  0x29   :  { %191 = vmatprep.subr.bf16.mxu0 %v282_v0  ;;  %v185_v9 = vld [vmem:[%s371_s4] ss:$0 sm:$0xff]  ;;  %s171_s23 = sshll.u32 %s284_s3, 4  ;;  %s172_s23 = int_to_ptr.vmem [resolvable:$true] %s171_s23 }
  0x2a   :  { %s250_s24 = scalar_lea.vmem %s172_s23, 16  ;;  %s254_s4 = scalar_lea.vmem %s172_s23, 32 }
  0x2b   :  { %p251_p2 = scmp.ne.s32.totalorder %s172_s23, %s250_s24  ;;  %p255_p3 = scmp.lt.s32.totalorder %s172_s23, %s172_s23 }
  0x2c   :  { %192 = vmatpush3.bf16.msra.mxu0 %v205_v2  ;;  %p256_p4 = scmp.lt.s32.totalorder %s254_s4, %s250_s24 }
  0x2e   :  { %p257_p5 = por %p256_p4, %p255_p3 }
  0x2f   :  { %194 = vmatmul.mubr.msk.bf16.vlgmr.msra.gmra.mrb[0].mxu0 %vm73_vm1, %v49_v3 }
  0x30   :  { %p258_p6 = pnand %p257_p5, %p251_p2 }
 0x102   :  { %v111_v5 = vpop.f32.mrb[0].mxu0 }
 0x103   :  { %v112_v6 = vadd.f32 %v181_v4, %v111_v5  ;;  %v195_v7 = vpop.f32.mrb[1].mxu0 }
 0x104   :  { %v114_v8 = vpop.f32.mrb[2].mxu0 }
 0x105   :  { %v117_v10 = vmax.f32 %v112_v6, 0.0  ;;  %v196_v11 = vpop.f32.mrb[3].mxu0 }
 0x107   :  { %v125_v12 = vmul.f32 %v185_v9, %v117_v10 }
 0x109   :  { %126 = vadd.xlane.f32.xlu0 %v125_v12 }
 0x196   :  { %v127_v14 = vpop.xlane.xlu0 %126 }
 0x197   :  { %v130_v15 = vadd.f32 %v129_v13, %v127_v14 }
 0x199   :  { %131 = vxpose.xlu0.b32.start.end [1/1] (short) (narrow) %v130_v15, 8 }
 0x219   :  { %v147_v16 = vpop.trf.xlu0 }
 0x21a   :  { %164 = vst.msk [vmem:[#allocation8] sm:$0x1] %vm163_vm2, %v147_v16 }
 0x21b   :  { %261 = shalt.err (!%p258_p6)
}
 0x21c   :  { %s262_s0 = scalar_lea.hbm %s372_s5, 16 }
 0x21d   :  { %p263_p7 = scmp.ne.s32.totalorder %s372_s5, %s262_s0  ;;  %p266_p8 = scmp.lt.u32.totalorder %s262_s0, %s372_s5 }
 0x21f   :  { %p268_p9 = pnand %p266_p8, %p263_p7 }
 0x221   :  { %271 = shalt.err (!%p268_p9)
}
 0x222   :  { %174 = dma.vmem_to_hbm [thread:$0]  %s172_s23, 16, %s372_s5, [#allocation5]  }
 0x223   :  { %276 = dma.done.wait [#allocation5], 16  }
 0x224   :  { %277 = vsyncadd [#allocation5], 4294967280 }
 0x225   :  { %178 = vsyncpa [#allocation4], 1 }
 0x226   :  { %179 = vsyncpa [#allocation7], 1 }
 0x227   :  { %180 = vsyncpa [#allocation5], 1 }

</bundles_post_ra>
